<compile_context>
chip_gen: v7x
topology: tpu7x:2x2x1
jax: 0.10.0
libtpu: 0.0.40
codegen_flags: <defaults>
</compile_context>

<pallas_src>
import functools
import math

import jax
import jax.numpy as jnp
from jax.experimental import pallas as pl
from jax.experimental.pallas import tpu as pltpu


def _round_up(x, m):
    return ((x + m - 1) // m) * m


def _mlp_kernel(x_ref, wgu_ref, wd_ref, o_ref, acc_ref, *, ti):
    # grid axis 0: M row tiles (parallel); grid axis 1: intermediate tiles (reduction)
    @pl.when(pl.program_id(1) == 0)
    def _():
        acc_ref[...] = jnp.zeros_like(acc_ref)

    # Cast the activation tile to the weight dtype so bf16 weights drive the
    # MXU fast (bf16 x bf16 -> f32) mode instead of the slow mixed/f32 path.
    x = x_ref[...].astype(wgu_ref.dtype)
    # Fused gate+up projection: one MXU pass, N = 2*ti, f32 accumulation.
    gu = jnp.dot(x, wgu_ref[...], preferred_element_type=jnp.float32)   # (tm, 2*ti)
    g = gu[:, :ti]
    u = gu[:, ti:]
    # SwiGLU in f32 on the VPU/EUP.
    h = (g * jax.nn.sigmoid(g)) * u
    # Down projection, accumulated in f32; h cast to weight dtype keeps bf16 MXU mode.
    acc_ref[...] += jnp.dot(h.astype(wd_ref.dtype), wd_ref[...],
                            preferred_element_type=jnp.float32)

    @pl.when(pl.program_id(1) == pl.num_programs(1) - 1)
    def _():
        o_ref[...] = acc_ref[...].astype(o_ref.dtype)


def prepare_qwen2_mlp_weights(wg, wu, wd, *, ti=512, dtype=jnp.bfloat16):
    """Pack weights ONCE at model init (not per forward call).

    Args (PyTorch nn.Linear [out, in] layout):
      wg, wu: [I, H]   gate_proj.weight / up_proj.weight
      wd:     [H, I]   down_proj.weight
      dtype:  MXU dtype for the packed weights (bf16 recommended on all gens).

    Returns:
      wgu_t: [H, 2*I_pad]  columns interleaved per ti-block:
             block j holds [gate tile j | up tile j], each ti wide.
      wd_t:  [I_pad, H]    transposed down weight (zero-padded rows).
    """
    I, H = wg.shape
    if dtype is not None:
        wg, wu, wd = wg.astype(dtype), wu.astype(dtype), wd.astype(dtype)
    I_pad = _round_up(I, ti)
    if I_pad != I:
        pad = I_pad - I
        wg = jnp.pad(wg, ((0, pad), (0, 0)))
        wu = jnp.pad(wu, ((0, pad), (0, 0)))
        wd = jnp.pad(wd, ((0, 0), (0, pad)))
    n_j = I_pad // ti
    wg_t = wg.T.reshape(H, n_j, ti)                       # [H, n_j, ti]
    wu_t = wu.T.reshape(H, n_j, ti)
    wgu_t = jnp.stack([wg_t, wu_t], axis=2).reshape(H, n_j * 2 * ti)
    wd_t = wd.T                                           # [I_pad, H]
    return wgu_t, wd_t


def qwen2_mlp_pallas(x, wgu_t, wd_t, *, tm=512, ti=512):
    """x: [..., H]; wgu_t/wd_t from prepare_qwen2_mlp_weights (same ti)."""
    orig_shape = x.shape
    H = orig_shape[-1]
    M = math.prod(orig_shape[:-1])
    I_pad, H2 = wd_t.shape
    assert H2 == H and wgu_t.shape == (H, 2 * I_pad)
    assert I_pad % ti == 0

    x2 = x.reshape(M, H)

    # Row tile: clamp to the problem size, rounded to 16 rows (bf16 sublane pair).
    tm_eff = min(tm, _round_up(M, 16))
    # v7x has 2 TensorCores sharded over the "parallel" grid axis: if there would
    # be only ONE row tile, halve the tile so both cores get work (when M allows).
    if _round_up(M, tm_eff) // tm_eff < 2 and M >= 32:
        tm_eff = _round_up(-(-M // 2), 16)
    M_pad = _round_up(M, tm_eff)
    if M_pad != M:
        x2 = jnp.pad(x2, ((0, M_pad - M), (0, 0)))

    grid = (M_pad // tm_eff, I_pad // ti)

    # Decode-sized row tiles leave weight-DMA latency exposed -> deeper buffering.
    deep_buffer = tm_eff <= 32
    w_bufs = 3 if deep_buffer else 2

    def _weight_spec(block_shape, index_map):
        if deep_buffer:
            try:
                return pl.BlockSpec(block_shape, index_map,
                                    pipeline_mode=pl.Buffered(3))
            except Exception:
                pass  # older jax: fall back to default double buffering
        return pl.BlockSpec(block_shape, index_map)

    # Explicit VMEM budget: pipelined blocks + f32 accumulator + f32 MXU/SwiGLU
    # intermediates, capped below physical VMEM with headroom (esp. v7x 64 MiB).
    itm = x2.dtype.itemsize
    wb = wgu_t.dtype.itemsize
    working = (2 * tm_eff * H * itm              # x blocks (double-buffered)
               + w_bufs * H * 2 * ti * wb        # fused gate|up weight blocks
               + w_bufs * ti * H * wb            # down-weight blocks
               + 2 * tm_eff * H * itm            # output blocks
               + tm_eff * H * 4                  # f32 accumulator scratch
               + tm_eff * 2 * ti * 4             # f32 (tm, 2*ti) MXU result
               + tm_eff * ti * 4)                # f32 SwiGLU intermediate
    try:
        vmem_cap = int(pltpu.get_tpu_info().vmem_capacity_bytes)
    except Exception:
        vmem_cap = 64 << 20                      # conservative (v7x-sized) fallback
    cap = int(0.78 * vmem_cap)                   # ~50 MiB on v7x, ~100 MiB on v5e/v6e
    vmem_limit = min(max(2 * working, 32 << 20), cap)
    vmem_limit = max(vmem_limit, min(working + working // 4, cap))

    flops = 6 * M_pad * H * I_pad                # 2*M*H*2I (gate+up) + 2*M*I*H (down)
    transcendentals = M_pad * I_pad              # sigmoid
    bytes_accessed = (x2.size * itm
                      + grid[0] * (wgu_t.size + wd_t.size) * wb  # weights re-streamed per row tile
                      + M_pad * H * itm)

    out2 = pl.pallas_call(
        functools.partial(_mlp_kernel, ti=ti),
        out_shape=jax.ShapeDtypeStruct((M_pad, H), x.dtype),
        grid_spec=pltpu.PrefetchScalarGridSpec(
            num_scalar_prefetch=0,
            grid=grid,
            in_specs=[
                pl.BlockSpec((tm_eff, H), lambda i, j: (i, 0)),        # x rows
                _weight_spec((H, 2 * ti), lambda i, j: (0, j)),        # fused gate|up cols
                _weight_spec((ti, H), lambda i, j: (j, 0)),            # down-weight rows
            ],
            out_specs=pl.BlockSpec((tm_eff, H), lambda i, j: (i, 0)),
            scratch_shapes=[pltpu.VMEM((tm_eff, H), jnp.float32)],
        ),
        compiler_params=pltpu.CompilerParams(
            dimension_semantics=("parallel", "arbitrary"),
            vmem_limit_bytes=int(vmem_limit)),
        cost_estimate=pl.CostEstimate(
            flops=flops, transcendentals=transcendentals,
            bytes_accessed=bytes_accessed),
    )(x2, wgu_t, wd_t)

    if M_pad != M:
        out2 = out2[:M]
    return out2.reshape(orig_shape)


def qwen2_mlp_ref(x, wg, wu, wd, compute_dtype=None):
    """Pure-JAX reference. compute_dtype mimics the kernel's quantized matmul inputs."""
    if compute_dtype is None:
        xc, wgc, wuc, wdc = x, wg, wu, wd
    else:
        xc = x.astype(compute_dtype)
        wgc = wg.astype(compute_dtype)
        wuc = wu.astype(compute_dtype)
        wdc = wd.astype(compute_dtype)
    g = jnp.dot(xc, wgc.T, preferred_element_type=jnp.float32)
    u = jnp.dot(xc, wuc.T, preferred_element_type=jnp.float32)
    h = (g * jax.nn.sigmoid(g)) * u
    if compute_dtype is not None:
        h = h.astype(compute_dtype)
    return jnp.dot(h, wdc.T, preferred_element_type=jnp.float32).astype(x.dtype)


if __name__ == "__main__":
    # Small shapes consistent with the module (scaled down from H=896 / I=4864).
    B, S, H, I = 1, 128, 256, 512

    key = jax.random.PRNGKey(0)
    kx, kg, ku, kd = jax.random.split(key, 4)

    x = jax.random.uniform(kx, (B, S, H), dtype=jnp.float32)  # like torch.rand

    # Deterministic nn.Linear-style init: U(-1/sqrt(in), 1/sqrt(in)), no bias.
    wg = jax.random.uniform(kg, (I, H), jnp.float32, -1.0, 1.0) / jnp.sqrt(H)
    wu = jax.random.uniform(ku, (I, H), jnp.float32, -1.0, 1.0) / jnp.sqrt(H)
    wd = jax.random.uniform(kd, (H, I), jnp.float32, -1.0, 1.0) / jnp.sqrt(I)

    # Done once at "model init": transpose + fuse gate/up, pack in bf16 so the
    # whole MXU path runs in bf16 on v5e/v6e/v7x (f32 accumulation in-kernel).
    ti = 256  # small demo tile so the reduction axis has >1 step; use 512 at full size
    wgu_t, wd_t = prepare_qwen2_mlp_weights(wg, wu, wd, ti=ti, dtype=jnp.bfloat16)

    out = qwen2_mlp_pallas(x, wgu_t, wd_t, tm=512, ti=ti)
    out = jax.block_until_ready(out)

    assert out.shape == (B, S, H) and out.dtype == x.dtype

    # Reference with matching bf16 matmul inputs (tight tolerance) ...
    ref_bf16 = qwen2_mlp_ref(x, wg, wu, wd, compute_dtype=jnp.bfloat16)
    assert jnp.allclose(out, ref_bf16, atol=1e-2, rtol=1e-2), "mismatch vs bf16 reference"
    # ... and sanity check against the pure-f32 reference (bf16 quantization noise).
    ref_f32 = qwen2_mlp_ref(x, wg, wu, wd)
    assert jnp.allclose(out, ref_f32, atol=5e-2, rtol=5e-2), "mismatch vs f32 reference"

    print("KERNEL_OK")
</pallas_src>

<mosaic_0001>
module attributes {stable_mosaic.version = 11 : i64} {
  func.func @_mlp_kernel(%arg0: i32, %arg1: i32, %arg2: memref<64x256xf32, #tpu.memory_space<vmem>>, %arg3: memref<256x512xbf16, #tpu.memory_space<vmem>>, %arg4: memref<256x256xbf16, #tpu.memory_space<vmem>>, %arg5: memref<64x256xf32, #tpu.memory_space<vmem>>, %arg6: memref<64x256xf32, #tpu.memory_space<vmem>>) attributes {dimension_semantics = [#tpu.dimension_semantics<parallel>, #tpu.dimension_semantics<arbitrary>], iteration_bounds = array<i64: 2, 2>, scalar_prefetch = 0 : i64, scratch_operands = 1 : i64, tpu.core_type = #tpu.core_type<tc>, window_params = [{transform_indices = @transform_0, window_bounds = array<i64: 64, 256>}, {transform_indices = @transform_1, window_bounds = array<i64: 256, 512>}, {transform_indices = @transform_2, window_bounds = array<i64: 256, 256>}, {transform_indices = @transform_3, window_bounds = array<i64: 64, 256>}]} {
    %c0_i32 = arith.constant 0 : i32
    %0 = arith.cmpi eq, %arg1, %c0_i32 : i32
    %1 = arith.extui %0 : i1 to i32
    %c0_i32_0 = arith.constant 0 : i32
    %2 = arith.cmpi ne, %1, %c0_i32_0 : i32
    scf.if %2 {
      %cst_13 = arith.constant 0.000000e+00 : f32
      %25 = vector.broadcast %cst_13 : f32 to vector<64x256xf32>
      %c0_14 = arith.constant 0 : index
      %c0_15 = arith.constant 0 : index
      %26 = vector.load %arg6[%c0_14, %c0_15] : memref<64x256xf32, #tpu.memory_space<vmem>>, vector<64x256xf32>
      tpu.vector_store %arg6[%c0_14, %c0_15], %25 {strides = array<i32>} : memref<64x256xf32, #tpu.memory_space<vmem>>, vector<64x256xf32>,
    } else {
    }
    %c0 = arith.constant 0 : index
    %c0_1 = arith.constant 0 : index
    %3 = vector.load %arg2[%c0, %c0_1] : memref<64x256xf32, #tpu.memory_space<vmem>>, vector<64x256xf32>
    %4 = arith.truncf %3 : vector<64x256xf32> to vector<64x256xbf16>
    %c0_2 = arith.constant 0 : index
    %c0_3 = arith.constant 0 : index
    %5 = vector.load %arg3[%c0_2, %c0_3] : memref<256x512xbf16, #tpu.memory_space<vmem>>, vector<256x512xbf16>
    %cst = arith.constant dense<0.000000e+00> : vector<64x512xf32>
    %6 = tpu.matmul %4, %5, %cst {dimension_numbers = #tpu.dot_dimension_numbers<[1], [0], [0], [1], [0, 0, 1, 1], [], []>} : vector<64x256xbf16>, vector<256x512xbf16>, vector<64x512xf32> -> vector<64x512xf32>
    %7 = vector.extract_strided_slice %6 {offsets = [0, 0], sizes = [64, 256], strides = [1, 1]} : vector<64x512xf32> to vector<64x256xf32>
    %8 = vector.extract_strided_slice %6 {offsets = [0, 256], sizes = [64, 256], strides = [1, 1]} : vector<64x512xf32> to vector<64x256xf32>
    %9 = arith.negf %7 : vector<64x256xf32>
    %10 = math.exp %9 : vector<64x256xf32>
    %cst_4 = arith.constant 1.000000e+00 : f32
    %11 = vector.broadcast %cst_4 : f32 to vector<64x256xf32>
    %12 = arith.addf %11, %10 : vector<64x256xf32>
    %13 = arith.divf %11, %12 : vector<64x256xf32>
    %14 = arith.mulf %7, %13 : vector<64x256xf32>
    %15 = arith.mulf %14, %8 : vector<64x256xf32>
    %c0_5 = arith.constant 0 : index
    %c0_6 = arith.constant 0 : index
    %16 = vector.load %arg6[%c0_5, %c0_6] : memref<64x256xf32, #tpu.memory_space<vmem>>, vector<64x256xf32>
    %17 = arith.truncf %15 : vector<64x256xf32> to vector<64x256xbf16>
    %c0_7 = arith.constant 0 : index
    %c0_8 = arith.constant 0 : index
    %18 = vector.load %arg4[%c0_7, %c0_8] : memref<256x256xbf16, #tpu.memory_space<vmem>>, vector<256x256xbf16>
    %cst_9 = arith.constant dense<0.000000e+00> : vector<64x256xf32>
    %19 = tpu.matmul %17, %18, %cst_9 {dimension_numbers = #tpu.dot_dimension_numbers<[1], [0], [0], [1], [0, 0, 1, 1], [], []>} : vector<64x256xbf16>, vector<256x256xbf16>, vector<64x256xf32> -> vector<64x256xf32>
    %20 = arith.addf %16, %19 : vector<64x256xf32>
    %c0_10 = arith.constant 0 : index
    %c0_11 = arith.constant 0 : index
    %21 = vector.load %arg6[%c0_10, %c0_11] : memref<64x256xf32, #tpu.memory_space<vmem>>, vector<64x256xf32>
    tpu.vector_store %arg6[%c0_10, %c0_11], %20 {strides = array<i32>} : memref<64x256xf32, #tpu.memory_space<vmem>>, vector<64x256xf32>,
    %c1_i32 = arith.constant 1 : i32
    %22 = arith.cmpi eq, %arg1, %c1_i32 : i32
    %23 = arith.extui %22 : i1 to i32
    %c0_i32_12 = arith.constant 0 : i32
    %24 = arith.cmpi ne, %23, %c0_i32_12 : i32
    scf.if %24 {
      %c0_13 = arith.constant 0 : index
      %c0_14 = arith.constant 0 : index
      %25 = vector.load %arg6[%c0_13, %c0_14] : memref<64x256xf32, #tpu.memory_space<vmem>>, vector<64x256xf32>
      %c0_15 = arith.constant 0 : index
      %c0_16 = arith.constant 0 : index
      %26 = vector.load %arg5[%c0_15, %c0_16] : memref<64x256xf32, #tpu.memory_space<vmem>>, vector<64x256xf32>
      tpu.vector_store %arg5[%c0_15, %c0_16], %25 {strides = array<i32>} : memref<64x256xf32, #tpu.memory_space<vmem>>, vector<64x256xf32>,
    } else {
    }
    return
  }
  func.func @transform_0(%arg0: i32, %arg1: i32) -> (i32, i32) {
    %c0_i32 = arith.constant 0 : i32
    %c0_i32_0 = arith.constant 0 : i32
    return %arg0, %c0_i32 : i32, i32
  }
  func.func @transform_1(%arg0: i32, %arg1: i32) -> (i32, i32) {
    %c0_i32 = arith.constant 0 : i32
    %c0_i32_0 = arith.constant 0 : i32
    return %c0_i32, %arg1 : i32, i32
  }
  func.func @transform_2(%arg0: i32, %arg1: i32) -> (i32, i32) {
    %c0_i32 = arith.constant 0 : i32
    %c0_i32_0 = arith.constant 0 : i32
    return %arg1, %c0_i32 : i32, i32
  }
  func.func @transform_3(%arg0: i32, %arg1: i32) -> (i32, i32) {
    %c0_i32 = arith.constant 0 : i32
    %c0_i32_0 = arith.constant 0 : i32
    return %arg0, %c0_i32 : i32, i32
  }
}

</mosaic_0001>

<bundles_post_ra>
// kernel: tpu_custom_call.1
= control target key start
LH: loop header
LB: loop body
LE: loop exit
PB: predicated region body
PF: predicated region fallthrough
CT: control target
= control target key end

     0   :  { %s2839_s0 = inlined_call_operand.hbm [shape: f32[128,256], index: 0, kind: input, shape index: {}]   ;;  %s2840_s1 = inlined_call_operand.hbm [shape: bf16[256,1024], index: 1, kind: input, shape index: {}]   ;;  %s2841_s2 = inlined_call_operand.hbm [shape: bf16[512,256], index: 2, kind: input, shape index: {}]   ;;  %s2842_s3 = inlined_call_operand.hbm [shape: f32[128,256], index: 3, kind: output, shape index: {}]  }
   0x1   :  { %2857 = sst [smem:[#allocation19_spill]] %s2840_s1 }
   0x2   :  { %2858 = sst [smem:[#allocation20_spill]] %s2842_s3 }
   0x3   :  { %8 = vsyncpa [#allocation4], 0 }
   0x4   :  { %10 = vsyncpa [#allocation4 + $0x1], 0 }
   0x5   :  { %11 = vsyncpa [#allocation7], 0 }
   0x6   :  { %13 = vsyncpa [#allocation7 + $0x1], 0 }
   0x7   :  { %14 = vsyncpa [#allocation5], 0 }
   0x8   :  { %16 = vsyncpa [#allocation5 + $0x1], 0  ;;  %s2242_s12 = smov 0   ;;  %s2244_s13 = smov 0  }
   0x9   :  { %s2246_s14 = smov 0   ;;  %s2248_s15 = smov 0  }
   0xa   :  { %s2250_s16 = smov 0   ;;  %s2252_s17 = smov 0  }
   0xb   :  { %s2254_s18 = smov 0   ;;  %s2256_s19 = smov 0  }
   0xc   :  { %s2258_s20 = smov 0   ;;  %s2260_s21 = smov 0  }
   0xd   :  { %s2262_s22 = smov 0  }
   0xe LB: > { %2859 = sst [smem:[#allocation13_spill]] %s2188_s17  ;;  %s31_s23 = sadd.s32 1, %s2200_s20  ;;  %s2208_s22 = sphi %s2262_s22, %s22_s22   ;;  %s2204_s21 = sphi %s2260_s21, %s2895_s21   ;;  %s2200_s20 = sphi %s2258_s20, %s2902_s20   ;;  %s2196_s19 = sphi %s2256_s19, %s2893_s19   ;;  %s2192_s18 = sphi %s2254_s18, %s2901_s18   ;;  %s2188_s17 = sphi %s2252_s17, %s2892_s17   ;;  %s2184_s16 = sphi %s2250_s16, %s2900_s16   ;;  %s2180_s15 = sphi %s2248_s15, %s2899_s15   ;;  %s2176_s14 = sphi %s2246_s14, %s2898_s14   ;;  %s2172_s13 = sphi %s2244_s13, %s2897_s13   ;;  %s2168_s12 = sphi %s2242_s12, %s2896_s12  }
   0xf   : > { %2860 = sst [smem:[#allocation14_spill]] %s2204_s21  ;;  %p2844_p0 = scmp.eq.s32.totalorder %s2208_s22, 0 }
  0x10   : > { %p2299_p1 = scmp.ge.s32.totalorder %s31_s23, 2  ;;  %s67_s25 = sadd.s32 1, %s2176_s14 }
  0x11   : > { %p74_p2 = scmp.ne.s32.totalorder %s2176_s14, %s2172_s13  ;;  %p2843_p5 = scmp.lt.s32.totalorder %s2208_s22, 4 }
  0x12   : > { %s2904_s23 = smov (%p2299_p1, %s31_s23), 0  ;;  %s178_s27 = sand.u32 1, %s2208_s22  }
  0x13   : > { %2862 = sst [smem:[#allocation15_spill]] %s2904_s23  ;;  %p76_p4 = por %p74_p2, %p2844_p0 }
  0x14   : > { %s64_s26 = ssub.s32 %s2200_s20, %s2904_s23  ;;  %s2847_s29 = sand.u32 1, %s2176_s14  }
  0x15   : > { %p65_p6 = scmp.eq.s32.totalorder %s64_s26, 0  ;;  %s1493_s30 = sshll.u32 %s2847_s29, 9 }
  0x16   : > { %s1627_s4 = sshll.u32 %s2200_s20, 8  ;;  %s2864_s1 = sld [smem:[#allocation19_spill]] }
  0x17   : > { %s2319_s28 = scalar_select %p65_p6, %s2176_s14, %s67_s25  }
  0x18   : > { %s182_s8 = scalar_lea.vmem [#allocation6], %s1493_s30  ;;  %p2332_p7 = pnand %p2843_p5, %p76_p4 }
  0x19   : > { %2863 = sst [smem:[#allocation16_spill]] %s2319_s28  ;;  %s189_s9 = sshll.u32 %s182_s8, 4  ;;  %s2336_s9 = int_to_ptr.vmem [resolvable:$true] %s189_s9 }
  0x1a   : > { %s2339_s11 = scalar_lea.sflag [#allocation7], %s178_s27  ;;  %p2848_p10 = pneg %p2332_p7 }
  0x1c   : > { %s2328_s7 = scalar_lea.hbm %s2864_s1, %s1627_s4  ;;  %s1997_s4 = scalar_lea.hbm %s2864_s1, 16384 }
  0x1d   : > { %s1992_s25 = scalar_lea.hbm %s2328_s7, 8192  ;;  %p1998_p13 = scmp.lt.u32.totalorder %s2328_s7, %s2864_s1 }
  0x1e   : > { %p1993_p9 = scmp.ne.s32.totalorder %s2328_s7, %s1992_s25  ;;  %p1999_p2 = scmp.lt.u32.totalorder %s1997_s4, %s1992_s25 }
  0x1f   : > { %p2001_p6 = scmp.lt.u32.totalorder %s1992_s25, %s2328_s7 }
  0x20   : > { %p1995_p11 = pnand %p2848_p10, %p1993_p9  ;;  %p2000_p4 = por %p1999_p2, %p1998_p13 }
  0x22   : > { %p1996_p12 = pneg %p1995_p11  ;;  %p2002_p5 = por %p2001_p6, %p2000_p4 }
  0x24   : > { %p2003_p3 = pnand %p2002_p5, %p1996_p12 }
  0x26   : > { %2006 = shalt.err (!%p2003_p3)
}
  0x27   : > { %s2007_s27 = scalar_lea.vmem %s2336_s9, 8192  ;;  %s2210_s8 = smov [#allocation6]  }
  0x28   : > { %p2008_p9 = scmp.ne.s32.totalorder %s2336_s9, %s2007_s27  ;;  %s2012_s26 = sshll.u32 %s2210_s8, 4  ;;  %s2013_s26 = int_to_ptr.vmem [resolvable:$false] %s2012_s26 }
  0x29   : > { %s2014_s30 = scalar_lea.vmem %s2013_s26, 16384  ;;  %p2015_p8 = scmp.lt.s32.totalorder %s2336_s9, %s2013_s26 }
  0x2a   : > { %p2010_p11 = pnand %p2008_p9, %p2848_p10  ;;  %p2016_p13 = scmp.lt.s32.totalorder %s2014_s30, %s2007_s27 }
  0x2c   : > { %p2011_p0 = pneg %p2010_p11  ;;  %p2017_p2 = por %p2016_p13, %p2015_p8 }
  0x2e   : > { %p2018_p4 = pnand %p2017_p2, %p2011_p0 }
  0x30   : > { %2021 = shalt.err (!%p2018_p4)
}
  0x31   : > { %s2211_s25 = smov 512   ;;  %s2845_s4 = smov 256  }
  0x32   : > { %s2846_s5 = smov 16   ;;  %p219_p0 = scmp.lt.s32.totalorder %s2208_s22, 5 }
  0x33   : > { %1678 = dma.hbm_to_vmem [thread:$0]  (!%p2332_p7), %s2328_s7, 8192, %s2336_s9, %s2339_s11, %s2211_s25, %s2845_s4, %s2846_s5  }
  0x34   : > { %p2866_p3 = scmp.ge.s32.totalorder %s2208_s22, 1  ;;  %s2377_s27 = sadd.s32 4294967295, %s2208_s22  }
  0x35   : > { %s1486_s8 = sadd.s32 4294967294, %s2208_s22   ;;  %s34_s26 = sadd.s32 1, %s2204_s21 }
  0x36   : > { %p2372_p5 = pnand %p2866_p3, %p219_p0  ;;  %s41_s30 = sadd.s32 1, %s2188_s17 }
  0x37   : > { %s2906_s26 = smov (!%p2299_p1, %s34_s26), %s2204_s21  ;;  %p48_p8 = scmp.ne.s32.totalorder %s2188_s17, %s2184_s16 }
  0x38   : > { %s2867_s6 = scalar_select %p2372_p5, 1, 0 }
  0x39   : > { %p54_p12 = scmp.ne.s32.totalorder %s2184_s16, %s2180_s15  ;;  %p36_p6 = scmp.ge.s32.totalorder %s2906_s26, 2 }
  0x3a   : > { %p55_p9 = scmp.eq.s32.totalorder %s2377_s27, 0  ;;  %p2868_p11 = scmp.eq.s32.totalorder %s2208_s22, 0 }
  0x3b   : > { %p130_p2 = scmp.eq.s32.totalorder %s2377_s27, 3  ;;  %s2908_s26 = smov (%p36_p6, %s2906_s26), 0 }
  0x3c   : > { %p2392_p13 = por %p2868_p11, %p48_p8  ;;  %2870 = sst [smem:[#allocation17_spill]] %s2908_s26 }
  0x3d   : > { %p2402_p1 = por %p55_p9, %p54_p12  ;;  %p2872_p4 = scmp.ne.s32.totalorder %s2172_s13, %s2168_s12 }
  0x3e   : > { %s38_s25 = ssub.s32 %s2204_s21, %s2908_s26  ;;  %p2415_p3 = por %p130_p2, %p48_p8 }
  0x3f   : > { %s2871_s24 = scalar_select %p2402_p1, 1, 0 }
  0x40   : > { %p2409_p0 = por %p2872_p4, %p55_p9  ;;  %p39_p11 = scmp.eq.s32.totalorder %s38_s25, 0 }
  0x41   : > { %s2874_s4 = scalar_select %p2415_p3, 1, 0 }
  0x42   : > { %s2873_s9 = scalar_select %p2409_p0, 1, 0 }
  0x43   : > { %p136_p6 = scmp.eq.s32.totalorder %s1486_s8, 3  ;;  %s156_s5 = sand.u32 1, %s2188_s17  }
  0x44   : > { %s1626_s29 = sshll.u32 %s2204_s21, 11  ;;  %s1489_s12 = sshll.u32 %s156_s5, 7 }
  0x45   : > { %s2422_s1 = scalar_select %p39_p11, %s2188_s17, %s41_s30  }
  0x46   : > { %p2427_p10 = por %p136_p6, %p54_p12  ;;  %s2434_s26 = scalar_lea.hbm %s2839_s0, %s1626_s29 }
  0x47   : > { %2875 = sst [smem:[#allocation18_spill]] %s2422_s1  ;;  %p2877_p8 = scmp.lt.s32.totalorder %s2208_s22, 4 }
  0x48   : > { %s2876_s23 = scalar_select %p2427_p10, 1, 0 }
  0x49   : > { %p2440_p9 = pnand %p2877_p8, %p2392_p13  ;;  %s160_s30 = scalar_lea.vmem [#allocation3], %s1489_s12 }
  0x4a   : > { %s168_s25 = sshll.u32 %s160_s30, 4  ;;  %s2879_s21 = sand.u32 1, %s2176_s14   ;;  %s2448_s25 = int_to_ptr.vmem [resolvable:$true] %s168_s25 }
  0x4b   : > { %s2446_s1 = sshll.u32 %s2879_s21, 8  ;;  %s2450_s3 = scalar_lea.sflag [#allocation4], %s156_s5 }
  0x4c   : > { %s2022_s28 = scalar_lea.hbm %s2434_s26, 2048  ;;  %p2024_p2 = pneg %p2440_p9 }
  0x4d   : > { %p2023_p12 = scmp.ne.s32.totalorder %s2434_s26, %s2022_s28  ;;  %s2027_s12 = scalar_lea.hbm %s2839_s0, 4096 }
  0x4e   : > { %p2028_p11 = scmp.lt.u32.totalorder %s2434_s26, %s2839_s0  ;;  %p2029_p6 = scmp.lt.u32.totalorder %s2027_s12, %s2022_s28 }
  0x4f   : > { %p2025_p13 = pnand %p2024_p2, %p2023_p12  ;;  %p2031_p10 = scmp.lt.u32.totalorder %s2022_s28, %s2434_s26 }
  0x50   : > { %p2030_p8 = por %p2029_p6, %p2028_p11 }
  0x51   : > { %p2026_p4 = pneg %p2025_p13 }
  0x52   : > { %p2032_p3 = por %p2031_p10, %p2030_p8 }
  0x54   : > { %p2033_p0 = pnand %p2032_p3, %p2026_p4 }
  0x56   : > { %2036 = shalt.err (!%p2033_p0)
}
  0x57   : > { %s2037_s21 = scalar_lea.vmem %s2448_s25, 2048  ;;  %s2214_s5 = smov [#allocation3]  }
  0x58   : > { %p2038_p12 = scmp.ne.s32.totalorder %s2448_s25, %s2037_s21  ;;  %s2042_s29 = sshll.u32 %s2214_s5, 4  ;;  %s2043_s29 = int_to_ptr.vmem [resolvable:$false] %s2042_s29 }
  0x59   : > { %s2044_s17 = scalar_lea.vmem %s2043_s29, 4096  ;;  %p2045_p5 = scmp.lt.s32.totalorder %s2448_s25, %s2043_s29 }
  0x5a   : > { %p2040_p13 = pnand %p2038_p12, %p2024_p2  ;;  %p2046_p11 = scmp.lt.s32.totalorder %s2044_s17, %s2037_s21 }
  0x5c   : > { %p2041_p1 = pneg %p2040_p13  ;;  %p2047_p6 = por %p2046_p11, %p2045_p5 }
  0x5e   : > { %p2048_p10 = pnand %p2047_p6, %p2041_p1 }
  0x60   : > { %2051 = shalt.err (!%p2048_p10)
}
  0x61   : > { %s2880_s28 = smov 16   ;;  %s2881_s7 = smov 256  }
  0x62   : > { %1675 = dma.hbm_to_vmem [thread:$0]  (!%p2440_p9), %s2434_s26, 2048, %s2448_s25, %s2450_s3, %s2881_s7, %s2881_s7, %s2880_s28  }
  0x63   : > { %s1629_s12 = sshll.u32 %s2200_s20, 12  ;;  %s203_s8 = scalar_lea.vmem [#allocation8], %s2446_s1 }
  0x64   : > { %s2485_s21 = scalar_lea.hbm %s2841_s2, %s1629_s12  ;;  %s211_s29 = sshll.u32 %s203_s8, 4  ;;  %s2488_s29 = int_to_ptr.vmem [resolvable:$true] %s211_s29 }
  0x65   : > { %s2052_s17 = scalar_lea.hbm %s2485_s21, 4096  ;;  %p2882_p1 = pneg %p2332_p7 }
  0x66   : > { %p2053_p5 = scmp.ne.s32.totalorder %s2485_s21, %s2052_s17  ;;  %s2057_s3 = scalar_lea.hbm %s2841_s2, 8192 }
  0x67   : > { %p2058_p9 = scmp.lt.u32.totalorder %s2485_s21, %s2841_s2  ;;  %p2059_p2 = scmp.lt.u32.totalorder %s2057_s3, %s2052_s17 }
  0x68   : > { %p2055_p0 = pnand %p2053_p5, %p2882_p1  ;;  %p2061_p8 = scmp.lt.u32.totalorder %s2052_s17, %s2485_s21 }
  0x69   : > { %p2060_p4 = por %p2059_p2, %p2058_p9 }
  0x6a   : > { %p2056_p3 = pneg %p2055_p0 }
  0x6b   : > { %p2062_p12 = por %p2061_p8, %p2060_p4 }
  0x6d   : > { %p2063_p13 = pnand %p2062_p12, %p2056_p3 }
  0x6f   : > { %2066 = shalt.err (!%p2063_p13)
}
  0x70   : > { %s2067_s1 = scalar_lea.vmem %s2488_s29, 4096  ;;  %p2883_p6 = pmov %p2882_p1 }
  0x71   : > { %p2068_p11 = scmp.ne.s32.totalorder %s2488_s29, %s2067_s1  ;;  %s2215_s12 = smov [#allocation8]  }
  0x72   : > { %s2072_s30 = sshll.u32 %s2215_s12, 4  ;;  %s2073_s30 = int_to_ptr.vmem [resolvable:$false] %s2072_s30 }
  0x73   : > { %p2070_p10 = pnand %p2068_p11, %p2883_p6  ;;  %s2074_s5 = scalar_lea.vmem %s2073_s30, 8192 }
  0x74   : > { %p2075_p1 = scmp.lt.s32.totalorder %s2488_s29, %s2073_s30  ;;  %p2076_p0 = scmp.lt.s32.totalorder %s2074_s5, %s2067_s1 }
  0x75   : > { %p2071_p5 = pneg %p2070_p10 }
  0x76   : > { %p2077_p9 = por %p2076_p0, %p2075_p1 }
  0x78   : > { %p2078_p2 = pnand %p2077_p9, %p2071_p5 }
  0x7a   : > { %2081 = shalt.err (!%p2078_p2)
}
  0x7b   : > { %s2216_s8 = smov 128   ;;  %s2217_s17 = smov 8  }
  0x7c   : > { %1681 = dma.hbm_to_vmem [thread:$0]  (!%p2332_p7), %s2485_s21, 4096, %s2488_s29, %s2339_s11, %s2216_s8, %s2216_s8, %s2217_s17  }
  0x7d   : > { %p2884_p3 = scmp.ne.s32.totalorder %s2867_s6, 0 }
  0x7e   : > { %s2517_s26 = sand.u32 (!%p2884_p3), 1, %s2184_s16   ;;  %p2885_p4 = scmp.ne.s32.totalorder (!%p2884_p3), %s2871_s24, 0 }
  0x7f   : > { %223 = sbr.rel (%p2884_p3) target bundleno = 742 (0x2e6), region = 32  ;;  %s1501_s25 = sshll.u32 (!%p2884_p3), %s2517_s26, 7 }
  0x80   : > { %s226_s3 = scalar_lea.sflag (!%p2884_p3), [#allocation4], %s2517_s26  ;;  %s2521_s28 = scalar_lea.vmem (!%p2884_p3), [#allocation3], %s1501_s25 }
  0x86   : > { %2155 = dma.done.wait (%p2885_p4), %s226_s3, 2048  }
  0x87   : > { %2157 = vsyncadd (%p2885_p4), %s226_s3, 4294965248  ;;  %s234_s10 = sand.u32 1, %s2377_s27   ;;  %s236_s11 = sand.u32 1, %s2172_s13  }
  0x88   : > { %s1502_s6 = sshll.u32 %s236_s11, 9  ;;  %s235_s21 = scalar_lea.sflag [#allocation7], %s234_s10 }
  0x89   : > { %s2529_s29 = scalar_lea.vmem [#allocation6], %s1502_s6  ;;  %p2886_p7 = scmp.ne.s32.totalorder %s2873_s9, 0 }
  0x8b   : > { %2159 = dma.done.wait (%p2886_p7), %s235_s21, 12288  }
  0x8c   : > { %2161 = vsyncadd (%p2886_p7), %s235_s21, 4294955008  ;;  %s1503_s7 = sshll.u32 %s236_s11, 8  ;;  %s2537_s12 = scalar_lea.vmem [#allocation9], %s1501_s25 }
  0x8d   : > { %s2535_s1 = scalar_lea.vmem [#allocation8], %s1503_s7  ;;  %p1505_p8 = scmp.ne.s32.totalorder %s2192_s18, 0 }
  0x8e   : > { %v2218_v0 = vmov (!%p1505_p8), 0.0  }
  0x8f   : > { %287 = sbr.rel (%p1505_p8) target bundleno = 151 (0x97), region = 48  ;;  %288 = vst [vmem:[#allocation2] sm:$0xff] (!%p1505_p8), %v2218_v0  ;;  %289 = vst [vmem:[#allocation2 + $0x8] sm:$0xff] (!%p1505_p8), %v2218_v0 }
  0x90   : > { %290 = vst [vmem:[#allocation2 + $0x10] sm:$0xff] (!%p1505_p8), %v2218_v0  ;;  %291 = vst [vmem:[#allocation2 + $0x18] sm:$0xff] (!%p1505_p8), %v2218_v0 }
  0x91   : > { %292 = vst [vmem:[#allocation2 + $0x20] sm:$0xff] (!%p1505_p8), %v2218_v0  ;;  %293 = vst [vmem:[#allocation2 + $0x28] sm:$0xff] (!%p1505_p8), %v2218_v0 }
  0x92   : > { %294 = vst [vmem:[#allocation2 + $0x30] sm:$0xff] (!%p1505_p8), %v2218_v0  ;;  %295 = vst [vmem:[#allocation2 + $0x38] sm:$0xff] (!%p1505_p8), %v2218_v0 }
  0x93   : > { %296 = vst [vmem:[#allocation2 + $0x40] sm:$0xff] (!%p1505_p8), %v2218_v0  ;;  %297 = vst [vmem:[#allocation2 + $0x48] sm:$0xff] (!%p1505_p8), %v2218_v0 }
  0x94   : > { %298 = vst [vmem:[#allocation2 + $0x50] sm:$0xff] (!%p1505_p8), %v2218_v0  ;;  %299 = vst [vmem:[#allocation2 + $0x58] sm:$0xff] (!%p1505_p8), %v2218_v0 }
  0x95   : > { %300 = vst [vmem:[#allocation2 + $0x60] sm:$0xff] (!%p1505_p8), %v2218_v0  ;;  %301 = vst [vmem:[#allocation2 + $0x68] sm:$0xff] (!%p1505_p8), %v2218_v0 }
  0x96   : > { %302 = vst [vmem:[#allocation2 + $0x70] sm:$0xff] %v2218_v0  ;;  %303 = vst [vmem:[#allocation2 + $0x78] sm:$0xff] %v2218_v0 }
  0x97 PF: > { %v1784_v1 = vld [vmem:[%s2529_s29 + $0x4] ss:$16 sps:$4 sm:$0xff]   ;;  %v1786_v2 = vld [vmem:[%s2529_s29] ss:$16 sps:$4 sm:$0xff]   ;;  %v1805_v8 = vld [vmem:[%s2529_s29 + $0xc] ss:$16 sps:$4 sm:$0xff]  }
  0x98   : > { %712 = vmatprep.subr.bf16.mxu0 %v1784_v1  ;;  %v1787_v3 = vld [vmem:[%s2529_s29 + $0x24] ss:$16 sps:$4 sm:$0xff]   ;;  %v1789_v4 = vld [vmem:[%s2529_s29 + $0x20] ss:$16 sps:$4 sm:$0xff]   ;;  %v1807_v9 = vld [vmem:[%s2529_s29 + $0x8] ss:$16 sps:$4 sm:$0xff]   ;;  %785 = vmatprep.subr.bf16.mxu1 %v1805_v8 }
  0x99   : > { %713 = vmatpush1.bf16.msra.mxu0 %v1786_v2  ;;  %v1790_v5 = vld [vmem:[%s2529_s29 + $0x44] ss:$16 sps:$4 sm:$0xff]   ;;  %v1792_v6 = vld [vmem:[%s2529_s29 + $0x40] ss:$16 sps:$4 sm:$0xff]   ;;  %v1811_v12 = vld [vmem:[%s2529_s29 + $0x2c] ss:$16 sps:$4 sm:$0xff]   ;;  %786 = vmatpush1.bf16.msra.mxu1 %v1807_v9 }
  0x9a   : > { %714 = vmatprep.subr.bf16.mxu0 %v1787_v3  ;;  %v1793_v7 = vld [vmem:[%s2529_s29 + $0x64] ss:$16 sps:$4 sm:$0xff]   ;;  %v1795_v10 = vld [vmem:[%s2529_s29 + $0x60] ss:$16 sps:$4 sm:$0xff]   ;;  %v1813_v13 = vld [vmem:[%s2529_s29 + $0x28] ss:$16 sps:$4 sm:$0xff]   ;;  %787 = vmatprep.subr.bf16.mxu1 %v1811_v12 }
  0x9b   : > { %v1796_v11 = vld [vmem:[%s2529_s29 + $0x84] ss:$16 sps:$4 sm:$0xff]   ;;  %v1798_v14 = vld [vmem:[%s2529_s29 + $0x80] ss:$16 sps:$4 sm:$0xff]   ;;  %v1817_v15 = vld [vmem:[%s2529_s29 + $0x4c] ss:$16 sps:$4 sm:$0xff]  }
  0x9c   : > { %v1799_v16 = vld [vmem:[%s2529_s29 + $0xa4] ss:$16 sps:$4 sm:$0xff]   ;;  %v1819_v17 = vld [vmem:[%s2529_s29 + $0x48] ss:$16 sps:$4 sm:$0xff]   ;;  %v1823_v18 = vld [vmem:[%s2529_s29 + $0x6c] ss:$16 sps:$4 sm:$0xff]  }
  0x9d   : > { %715 = vmatpush1.bf16.msra.mxu0 %v1789_v4  ;;  %788 = vmatpush1.bf16.msra.mxu1 %v1813_v13  ;;  %v1801_v19 = vld [vmem:[%s2529_s29 + $0xa0] ss:$16 sps:$4 sm:$0xff]   ;;  %v1802_v20 = vld [vmem:[%s2529_s29 + $0xc4] ss:$16 sps:$4 sm:$0xff]   ;;  %v1825_v21 = vld [vmem:[%s2529_s29 + $0x68] ss:$16 sps:$4 sm:$0xff]  }
  0x9e   : > { %716 = vmatprep.subr.bf16.mxu0 %v1790_v5  ;;  %789 = vmatprep.subr.bf16.mxu1 %v1817_v15  ;;  %v1829_v22 = vld [vmem:[%s2529_s29 + $0x8c] ss:$16 sps:$4 sm:$0xff]   ;;  %v1804_v23 = vld [vmem:[%s2529_s29 + $0xc0] ss:$16 sps:$4 sm:$0xff]   ;;  %v1808_v24 = vld [vmem:[%s2529_s29 + $0xe4] ss:$16 sps:$4 sm:$0xff]  }
  0x9f   : > { %v1831_v25 = vld [vmem:[%s2529_s29 + $0x88] ss:$16 sps:$4 sm:$0xff]   ;;  %v1835_v26 = vld [vmem:[%s2529_s29 + $0xac] ss:$16 sps:$4 sm:$0xff]   ;;  %v1810_v27 = vld [vmem:[%s2529_s29 + $0xe0] ss:$16 sps:$4 sm:$0xff]  }
  0xa0   : > { %v1814_v28 = vld [vmem:[%s2529_s29 + $0x104] ss:$16 sps:$4 sm:$0xff]   ;;  %v1837_v29 = vld [vmem:[%s2529_s29 + $0xa8] ss:$16 sps:$4 sm:$0xff]   ;;  %v1841_v30 = vld [vmem:[%s2529_s29 + $0xcc] ss:$16 sps:$4 sm:$0xff]  }
  0xa1   : > { %717 = vmatpush1.bf16.msra.mxu0 %v1792_v6  ;;  %790 = vmatpush1.bf16.msra.mxu1 %v1819_v17  ;;  %v1816_v31 = vld [vmem:[%s2529_s29 + $0x100] ss:$16 sps:$4 sm:$0xff]   ;;  %v1820_v32 = vld [vmem:[%s2529_s29 + $0x124] ss:$16 sps:$4 sm:$0xff]   ;;  %v1843_v33 = vld [vmem:[%s2529_s29 + $0xc8] ss:$16 sps:$4 sm:$0xff]  }
  0xa2   : > { %718 = vmatprep.subr.bf16.mxu0 %v1793_v7  ;;  %791 = vmatprep.subr.bf16.mxu1 %v1823_v18  ;;  %v1847_v34 = vld [vmem:[%s2529_s29 + $0xec] ss:$16 sps:$4 sm:$0xff]   ;;  %v1822_v36 = vld [vmem:[%s2529_s29 + $0x120] ss:$16 sps:$4 sm:$0xff]   ;;  %v1826_v38 = vld [vmem:[%s2529_s29 + $0x144] ss:$16 sps:$4 sm:$0xff]  }
  0xa3   : > { %v305_v35 = vld [vmem:[%s2521_s28 + $0x8] sm:$0xff]  ;;  %v307_v37 = vld [vmem:[%s2521_s28 + $0x18] sm:$0xff]  ;;  %v1828_v42 = vld [vmem:[%s2529_s29 + $0x140] ss:$16 sps:$4 sm:$0xff]   ;;  %p1618_p12 = scmp.ne.s32.totalorder %s2192_s18, 1 }
  0xa4   : > { %v321_v39 = vpack.c.bf16 %v307_v37, %v305_v35  ;;  %v1849_v40 = vld [vmem:[%s2529_s29 + $0xe8] ss:$16 sps:$4 sm:$0xff]   ;;  %v1853_v41 = vld [vmem:[%s2529_s29 + $0x10c] ss:$16 sps:$4 sm:$0xff]   ;;  %v1832_v43 = vld [vmem:[%s2529_s29 + $0x164] ss:$16 sps:$4 sm:$0xff]  }
  0xa5   : > { %719 = vmatpush1.bf16.msra.mxu0 %v1795_v10  ;;  %792 = vmatpush1.bf16.msra.mxu1 %v1825_v21  ;;  %v1855_v44 = vld [vmem:[%s2529_s29 + $0x108] ss:$16 sps:$4 sm:$0xff]   ;;  %v1859_v45 = vld [vmem:[%s2529_s29 + $0x12c] ss:$16 sps:$4 sm:$0xff]   ;;  %v1834_v46 = vld [vmem:[%s2529_s29 + $0x160] ss:$16 sps:$4 sm:$0xff]  }
  0xa6   : > { %720 = vmatprep.subr.bf16.mxu0 %v1796_v11  ;;  %793 = vmatprep.subr.bf16.mxu1 %v1829_v22  ;;  %v1838_v47 = vld [vmem:[%s2529_s29 + $0x184] ss:$16 sps:$4 sm:$0xff]   ;;  %v1861_v48 = vld [vmem:[%s2529_s29 + $0x128] ss:$16 sps:$4 sm:$0xff]   ;;  %v1862_v49 = vld [vmem:[%s2529_s29 + $0x14c] ss:$16 sps:$4 sm:$0xff]  }
  0xa7   : > { %744 = vmatprep.mubr.bf16.mxu0 %v321_v39  ;;  %817 = vmatprep.mubr.bf16.mxu1 %v321_v39  ;;  %v1840_v50 = vld [vmem:[%s2529_s29 + $0x180] ss:$16 sps:$4 sm:$0xff]   ;;  %v1844_v51 = vld [vmem:[%s2529_s29 + $0x1a4] ss:$16 sps:$4 sm:$0xff]   ;;  %v1864_v52 = vld [vmem:[%s2529_s29 + $0x148] ss:$16 sps:$4 sm:$0xff]  }
  0xa8   : > { %v1865_v53 = vld [vmem:[%s2529_s29 + $0x16c] ss:$16 sps:$4 sm:$0xff]   ;;  %v1846_v54 = vld [vmem:[%s2529_s29 + $0x1a0] ss:$16 sps:$4 sm:$0xff]   ;;  %v1850_v55 = vld [vmem:[%s2529_s29 + $0x1c4] ss:$16 sps:$4 sm:$0xff]  }
  0xa9   : > { %721 = vmatpush1.bf16.msra.mxu0 %v1798_v14  ;;  %794 = vmatpush1.bf16.msra.mxu1 %v1831_v25  ;;  %v1867_v56 = vld [vmem:[%s2529_s29 + $0x168] ss:$16 sps:$4 sm:$0xff]   ;;  %v1868_v57 = vld [vmem:[%s2529_s29 + $0x18c] ss:$16 sps:$4 sm:$0xff]   ;;  %v1852_v58 = vld [vmem:[%s2529_s29 + $0x1c0] ss:$16 sps:$4 sm:$0xff]  }
  0xaa   : > { %722 = vmatprep.subr.bf16.mxu0 %v1799_v16  ;;  %795 = vmatprep.subr.bf16.mxu1 %v1835_v26  ;;  %v1856_v59 = vld [vmem:[%s2529_s29 + $0x1e4] ss:$16 sps:$4 sm:$0xff]   ;;  %v1870_v60 = vld [vmem:[%s2529_s29 + $0x188] ss:$16 sps:$4 sm:$0xff]   ;;  %v1858_v61 = vld [vmem:[%s2529_s29 + $0x1e0] ss:$16 sps:$4 sm:$0xff]  }
  0xab   : > { %v304_v62 = vld [vmem:[%s2521_s28] sm:$0xff]  ;;  %v306_v63 = vld [vmem:[%s2521_s28 + $0x10] sm:$0xff]  ;;  %v1871_v0 = vld [vmem:[%s2529_s29 + $0x1ac] ss:$16 sps:$4 sm:$0xff]  }
  0xac   : > { %v309_v1 = vld [vmem:[%s2521_s28 + $0x28] sm:$0xff]  ;;  %v311_v2 = vld [vmem:[%s2521_s28 + $0x38] sm:$0xff]  ;;  %v320_v6 = vpack.c.bf16 %v306_v63, %v304_v62  ;;  %v308_v12 = vld [vmem:[%s2521_s28 + $0x20] sm:$0xff] }
  0xad   : > { %723 = vmatpush1.bf16.msra.mxu0 %v1801_v19  ;;  %796 = vmatpush1.bf16.msra.mxu1 %v1837_v29  ;;  %v1882_v3 = vld [vmem:[%s2535_s1 + $0x4] ss:$8 sps:$4 sm:$0xff]   ;;  %v1873_v4 = vld [vmem:[%s2529_s29 + $0x1a8] ss:$16 sps:$4 sm:$0xff]   ;;  %v323_v7 = vpack.c.bf16 %v311_v2, %v309_v1  ;;  %v1885_v9 = vld [vmem:[%s2535_s1 + $0x14] ss:$8 sps:$4 sm:$0xff]  }
  0xae   : > { %724 = vmatprep.subr.bf16.mxu0 %v1802_v20  ;;  %797 = vmatprep.subr.bf16.mxu1 %v1841_v30  ;;  %v1874_v5 = vld [vmem:[%s2529_s29 + $0x1cc] ss:$16 sps:$4 sm:$0xff]   ;;  %v1880_v8 = vld [vmem:[%s2535_s1] ss:$8 sps:$4 sm:$0xff]   ;;  %v310_v13 = vld [vmem:[%s2521_s28 + $0x30] sm:$0xff] }
  0xaf   : > { %v1876_v10 = vld [vmem:[%s2529_s29 + $0x1c8] ss:$16 sps:$4 sm:$0xff]   ;;  %v1877_v11 = vld [vmem:[%s2529_s29 + $0x1ec] ss:$16 sps:$4 sm:$0xff]   ;;  %v322_v19 = vpack.c.bf16 %v310_v13, %v308_v12 }
  0xb0   : > { %v1883_v14 = vld [vmem:[%s2535_s1 + $0x10] ss:$8 sps:$4 sm:$0xff]   ;;  %v313_v15 = vld [vmem:[%s2521_s28 + $0x48] sm:$0xff]  ;;  %v1891_v22 = vld [vmem:[%s2535_s1 + $0x34] ss:$8 sps:$4 sm:$0xff]  }
  0xb1   : > { %725 = vmatpush1.bf16.msra.mxu0 %v1804_v23  ;;  %798 = vmatpush1.bf16.msra.mxu1 %v1843_v33  ;;  %v315_v16 = vld [vmem:[%s2521_s28 + $0x58] sm:$0xff]  ;;  %v1888_v17 = vld [vmem:[%s2535_s1 + $0x24] ss:$8 sps:$4 sm:$0xff]   ;;  %v1886_v21 = vld [vmem:[%s2535_s1 + $0x20] ss:$8 sps:$4 sm:$0xff]  }
  0xb2   : > { %726 = vmatprep.subr.bf16.mxu0 %v1808_v24  ;;  %799 = vmatprep.subr.bf16.mxu1 %v1847_v34  ;;  %v1879_v18 = vld [vmem:[%s2529_s29 + $0x1e8] ss:$16 sps:$4 sm:$0xff]   ;;  %v325_v20 = vpack.c.bf16 %v315_v16, %v313_v15  ;;  %v312_v23 = vld [vmem:[%s2521_s28 + $0x40] sm:$0xff]  ;;  %v314_v24 = vld [vmem:[%s2521_s28 + $0x50] sm:$0xff] }
  0xb3   : > { %v1889_v25 = vld [vmem:[%s2535_s1 + $0x30] ss:$8 sps:$4 sm:$0xff]   ;;  %v317_v26 = vld [vmem:[%s2521_s28 + $0x68] sm:$0xff]  ;;  %v324_v29 = vpack.c.bf16 %v314_v24, %v312_v23  ;;  %v316_v33 = vld [vmem:[%s2521_s28 + $0x60] sm:$0xff] }
  0xb4   : > { %v318_v34 = vld [vmem:[%s2521_s28 + $0x70] sm:$0xff] }
  0xb5   : > { %727 = vmatpush1.bf16.msra.mxu0 %v1810_v27  ;;  %800 = vmatpush1.bf16.msra.mxu1 %v1849_v40  ;;  %v319_v27 = vld [vmem:[%s2521_s28 + $0x78] sm:$0xff]  ;;  %v326_v37 = vpack.c.bf16 %v318_v34, %v316_v33 }
  0xb6   : > { %728 = vmatprep.subr.bf16.mxu0 %v1814_v28  ;;  %801 = vmatprep.subr.bf16.mxu1 %v1853_v41  ;;  %v1894_v28 = vld [vmem:[%s2535_s1 + $0x44] ss:$8 sps:$4 sm:$0xff]   ;;  %v327_v30 = vpack.c.bf16 %v319_v27, %v317_v26  ;;  %v1895_v35 = vld [vmem:[%s2535_s1 + $0x50] ss:$8 sps:$4 sm:$0xff]   ;;  %v1903_v39 = vld [vmem:[%s2535_s1 + $0x74] ss:$8 sps:$4 sm:$0xff]  }
  0xb7   : > { %v1901_v40 = vld [vmem:[%s2535_s1 + $0x70] ss:$8 sps:$4 sm:$0xff]   ;;  %v1906_v41 = vld [vmem:[%s2535_s1 + $0x84] ss:$8 sps:$4 sm:$0xff]  }
  0xb9   : > { %729 = vmatpush1.bf16.msra.mxu0 %v1816_v31  ;;  %802 = vmatpush1.bf16.msra.mxu1 %v1855_v44  ;;  %v1892_v31 = vld [vmem:[%s2535_s1 + $0x40] ss:$8 sps:$4 sm:$0xff]   ;;  %v1907_v44 = vld [vmem:[%s2535_s1 + $0x90] ss:$8 sps:$4 sm:$0xff]  }
  0xba   : > { %730 = vmatprep.subr.bf16.mxu0 %v1820_v32  ;;  %803 = vmatprep.subr.bf16.mxu1 %v1859_v45  ;;  %v1897_v32 = vld [vmem:[%s2535_s1 + $0x54] ss:$8 sps:$4 sm:$0xff]   ;;  %v1912_v45 = vld [vmem:[%s2535_s1 + $0xa4] ss:$8 sps:$4 sm:$0xff]  }
  0xbd   : > { %731 = vmatpush1.bf16.msra.mxu0 %v1822_v36  ;;  %804 = vmatpush1.bf16.msra.mxu1 %v1861_v48  ;;  %v1900_v36 = vld [vmem:[%s2535_s1 + $0x64] ss:$8 sps:$4 sm:$0xff]   ;;  %v1913_v48 = vld [vmem:[%s2535_s1 + $0xb0] ss:$8 sps:$4 sm:$0xff]  }
  0xbe   : > { %732 = vmatprep.subr.bf16.mxu0 %v1826_v38  ;;  %805 = vmatprep.subr.bf16.mxu1 %v1862_v49  ;;  %v1898_v38 = vld [vmem:[%s2535_s1 + $0x60] ss:$8 sps:$4 sm:$0xff]   ;;  %v1918_v49 = vld [vmem:[%s2535_s1 + $0xc4] ss:$8 sps:$4 sm:$0xff]  }
  0xc1   : > { %733 = vmatpush1.bf16.msra.mxu0 %v1828_v42  ;;  %806 = vmatpush1.bf16.msra.mxu1 %v1864_v52  ;;  %v1904_v42 = vld [vmem:[%s2535_s1 + $0x80] ss:$8 sps:$4 sm:$0xff]   ;;  %v1919_v52 = vld [vmem:[%s2535_s1 + $0xd0] ss:$8 sps:$4 sm:$0xff]  }
  0xc2   : > { %734 = vmatprep.subr.bf16.mxu0 %v1832_v43  ;;  %807 = vmatprep.subr.bf16.mxu1 %v1865_v53  ;;  %v1909_v43 = vld [vmem:[%s2535_s1 + $0x94] ss:$8 sps:$4 sm:$0xff]   ;;  %v1924_v53 = vld [vmem:[%s2535_s1 + $0xe4] ss:$8 sps:$4 sm:$0xff]  }
  0xc5   : > { %735 = vmatpush1.bf16.msra.mxu0 %v1834_v46  ;;  %808 = vmatpush1.bf16.msra.mxu1 %v1867_v56  ;;  %v1910_v46 = vld [vmem:[%s2535_s1 + $0xa0] ss:$8 sps:$4 sm:$0xff]   ;;  %v1925_v56 = vld [vmem:[%s2535_s1 + $0xf0] ss:$8 sps:$4 sm:$0xff]  }
  0xc6   : > { %736 = vmatprep.subr.bf16.mxu0 %v1838_v47  ;;  %809 = vmatprep.subr.bf16.mxu1 %v1868_v57  ;;  %v1915_v47 = vld [vmem:[%s2535_s1 + $0xb4] ss:$8 sps:$4 sm:$0xff]  }
  0xc9   : > { %737 = vmatpush1.bf16.msra.mxu0 %v1840_v50  ;;  %810 = vmatpush1.bf16.msra.mxu1 %v1870_v60  ;;  %v1916_v50 = vld [vmem:[%s2535_s1 + $0xc0] ss:$8 sps:$4 sm:$0xff]  }
  0xca   : > { %738 = vmatprep.subr.bf16.mxu0 %v1844_v51  ;;  %811 = vmatprep.subr.bf16.mxu1 %v1871_v0  ;;  %v1921_v51 = vld [vmem:[%s2535_s1 + $0xd4] ss:$8 sps:$4 sm:$0xff]  }
  0xcd   : > { %739 = vmatpush1.bf16.msra.mxu0 %v1846_v54  ;;  %812 = vmatpush1.bf16.msra.mxu1 %v1873_v4  ;;  %v1922_v54 = vld [vmem:[%s2535_s1 + $0xe0] ss:$8 sps:$4 sm:$0xff]  }
  0xce   : > { %740 = vmatprep.subr.bf16.mxu0 %v1850_v55  ;;  %813 = vmatprep.subr.bf16.mxu1 %v1874_v5  ;;  %v1927_v55 = vld [vmem:[%s2535_s1 + $0xf4] ss:$8 sps:$4 sm:$0xff]  }
  0xd1   : > { %741 = vmatpush1.bf16.msra.mxu0 %v1852_v58  ;;  %814 = vmatpush1.bf16.msra.mxu1 %v1876_v10 }
  0xd2   : > { %742 = vmatprep.subr.bf16.mxu0 %v1856_v59  ;;  %815 = vmatprep.subr.bf16.mxu1 %v1877_v11 }
  0xd5   : > { %743 = vmatpush1.bf16.msra.mxu0 %v1858_v61  ;;  %816 = vmatpush1.bf16.msra.mxu1 %v1879_v18 }
  0xd6   : > { %1202 = vmatprep.subr.bf16.mxu0 %v1882_v3  ;;  %1632 = vmatprep.subr.bf16.mxu1 %v1882_v3 }
  0xd8   : > { %745 = vmatmul.mubr.bf16.vlgmr.msra.gmra.mrb[0].mxu0 %v320_v6  ;;  %818 = vmatmul.mubr.bf16.vlgmr.msra.gmra.mrb[0].mxu1 %v320_v6 }
  0xd9   : > { %754 = vmatprep.mubr.bf16.mxu0 %v323_v7  ;;  %1203 = vmatpush1.bf16.msra.mxu0 %v1880_v8 }
  0xda   : > { %1204 = vmatprep.subr.bf16.mxu0 %v1885_v9  ;;  %827 = vmatprep.mubr.bf16.mxu1 %v323_v7 }
  0xdb   : > { %1648 = vmatpush1.bf16.msra.mxu1 %v1880_v8 }
  0xdc   : > { %1633 = vmatprep.subr.bf16.mxu1 %v1885_v9 }
  0xdd   : > { %1205 = vmatpush1.bf16.msra.mxu0 %v1883_v14 }
  0xde   : > { %1206 = vmatprep.subr.bf16.mxu0 %v1888_v17 }
  0xdf   : > { %1649 = vmatpush1.bf16.msra.mxu1 %v1883_v14 }
  0xe0   : > { %755 = vmatmul.mubr.bf16.gmra.mrb[4].mxu0 %v322_v19  ;;  %1634 = vmatprep.subr.bf16.mxu1 %v1888_v17 }
  0xe1   : > { %764 = vmatprep.mubr.bf16.mxu0 %v325_v20  ;;  %1207 = vmatpush1.bf16.msra.mxu0 %v1886_v21 }
  0xe2   : > { %1208 = vmatprep.subr.bf16.mxu0 %v1891_v22  ;;  %828 = vmatmul.mubr.bf16.gmra.mrb[4].mxu1 %v322_v19 }
  0xe3   : > { %837 = vmatprep.mubr.bf16.mxu1 %v325_v20  ;;  %1650 = vmatpush1.bf16.msra.mxu1 %v1886_v21 }
  0xe4   : > { %1635 = vmatprep.subr.bf16.mxu1 %v1891_v22 }
  0xe5   : > { %1209 = vmatpush1.bf16.msra.mxu0 %v1889_v25 }
  0xe6   : > { %1210 = vmatprep.subr.bf16.mxu0 %v1894_v28 }
  0xe7   : > { %1651 = vmatpush1.bf16.msra.mxu1 %v1889_v25 }
  0xe8   : > { %765 = vmatmul.mubr.bf16.gmra.mrb[8].mxu0 %v324_v29  ;;  %1636 = vmatprep.subr.bf16.mxu1 %v1894_v28 }
  0xe9   : > { %774 = vmatprep.mubr.bf16.mxu0 %v327_v30  ;;  %1211 = vmatpush1.bf16.msra.mxu0 %v1892_v31 }
  0xea   : > { %1212 = vmatprep.subr.bf16.mxu0 %v1897_v32  ;;  %838 = vmatmul.mubr.bf16.gmra.mrb[8].mxu1 %v324_v29 }
  0xeb   : > { %847 = vmatprep.mubr.bf16.mxu1 %v327_v30  ;;  %1652 = vmatpush1.bf16.msra.mxu1 %v1892_v31 }
  0xec   : > { %1637 = vmatprep.subr.bf16.mxu1 %v1897_v32 }
  0xed   : > { %1213 = vmatpush1.bf16.msra.mxu0 %v1895_v35 }
  0xee   : > { %1214 = vmatprep.subr.bf16.mxu0 %v1900_v36 }
  0xef   : > { %1653 = vmatpush1.bf16.msra.mxu1 %v1895_v35 }
  0xf0   : > { %775 = vmatmul.mubr.bf16.gmra.mrb[12].mxu0 %v326_v37  ;;  %1638 = vmatprep.subr.bf16.mxu1 %v1900_v36 }
  0xf1   : > { %1215 = vmatpush1.bf16.msra.mxu0 %v1898_v38 }
  0xf2   : > { %848 = vmatmul.mubr.bf16.gmra.mrb[12].mxu1 %v326_v37  ;;  %1216 = vmatprep.subr.bf16.mxu0 %v1903_v39 }
  0xf3   : > { %1654 = vmatpush1.bf16.msra.mxu1 %v1898_v38 }
  0xf4   : > { %1639 = vmatprep.subr.bf16.mxu1 %v1903_v39 }
  0xf5   : > { %1217 = vmatpush1.bf16.msra.mxu0 %v1901_v40 }
  0xf6   : > { %1218 = vmatprep.subr.bf16.mxu0 %v1906_v41 }
  0xf7   : > { %1655 = vmatpush1.bf16.msra.mxu1 %v1901_v40 }
  0xf8   : > { %1640 = vmatprep.subr.bf16.mxu1 %v1906_v41 }
  0xf9   : > { %1219 = vmatpush1.bf16.msra.mxu0 %v1904_v42 }
  0xfa   : > { %1220 = vmatprep.subr.bf16.mxu0 %v1909_v43 }
  0xfb   : > { %1656 = vmatpush1.bf16.msra.mxu1 %v1904_v42 }
  0xfc   : > { %1641 = vmatprep.subr.bf16.mxu1 %v1909_v43 }
  0xfd   : > { %1221 = vmatpush1.bf16.msra.mxu0 %v1907_v44 }
  0xfe   : > { %1222 = vmatprep.subr.bf16.mxu0 %v1912_v45 }
  0xff   : > { %1657 = vmatpush1.bf16.msra.mxu1 %v1907_v44 }
 0x100   : > { %1642 = vmatprep.subr.bf16.mxu1 %v1912_v45 }
 0x101   : > { %1223 = vmatpush1.bf16.msra.mxu0 %v1910_v46 }
 0x102   : > { %1224 = vmatprep.subr.bf16.mxu0 %v1915_v47 }
 0x103   : > { %1658 = vmatpush1.bf16.msra.mxu1 %v1910_v46 }
 0x104   : > { %1643 = vmatprep.subr.bf16.mxu1 %v1915_v47 }
 0x105   : > { %1225 = vmatpush1.bf16.msra.mxu0 %v1913_v48 }
 0x106   : > { %1226 = vmatprep.subr.bf16.mxu0 %v1918_v49 }
 0x107   : > { %1659 = vmatpush1.bf16.msra.mxu1 %v1913_v48 }
 0x108   : > { %1644 = vmatprep.subr.bf16.mxu1 %v1918_v49 }
 0x109   : > { %1227 = vmatpush1.bf16.msra.mxu0 %v1916_v50 }
 0x10a   : > { %1228 = vmatprep.subr.bf16.mxu0 %v1921_v51 }
 0x10b   : > { %1660 = vmatpush1.bf16.msra.mxu1 %v1916_v50 }
 0x10c   : > { %1645 = vmatprep.subr.bf16.mxu1 %v1921_v51 }
 0x10d   : > { %1229 = vmatpush1.bf16.msra.mxu0 %v1919_v52 }
 0x10e   : > { %1230 = vmatprep.subr.bf16.mxu0 %v1924_v53 }
 0x10f   : > { %1661 = vmatpush1.bf16.msra.mxu1 %v1919_v52 }
 0x110   : > { %1646 = vmatprep.subr.bf16.mxu1 %v1924_v53 }
 0x111   : > { %1231 = vmatpush1.bf16.msra.mxu0 %v1922_v54 }
 0x112   : > { %1232 = vmatprep.subr.bf16.mxu0 %v1927_v55 }
 0x113   : > { %1662 = vmatpush1.bf16.msra.mxu1 %v1922_v54 }
 0x114   : > { %1647 = vmatprep.subr.bf16.mxu1 %v1927_v55 }
 0x115   : > { %1233 = vmatpush1.bf16.msra.mxu0 %v1925_v56 }
 0x117   : > { %1663 = vmatpush1.bf16.msra.mxu1 %v1925_v56 }
 0x1ab   : > { %v2652_v57 = vpop.f32.mrb[0].mxu0  ;;  %v2672_v6 = vpop.f32.mrb[0].mxu1 }
 0x1ac   : > { %v1570_v58 = vmul.f32 -1.442695, %v2652_v57  ;;  %v2655_v59 = vpop.f32.mrb[1].mxu0  ;;  %v2677_v9 = vpop.f32.mrb[1].mxu1 }
 0x1ad   : > { %v1571_v60 = vmul.f32 -1.442695, %v2655_v59  ;;  %v2658_v61 = vpop.f32.mrb[2].mxu0  ;;  %v2680_v11 = vpop.f32.mrb[2].mxu1 }
 0x1ae   : > { %1928 = vpow2.f32 %v1570_v58  ;;  %v1572_v62 = vmul.f32 -1.442695, %v2658_v61  ;;  %v2661_v63 = vpop.f32.mrb[3].mxu0  ;;  %v2682_v13 = vpop.f32.mrb[3].mxu1 }
 0x1af   : > { %1930 = vpow2.f32 %v1571_v60  ;;  %v1573_v0 = vmul.f32 -1.442695, %v2661_v63 }
 0x1b0   : > { %1932 = vpow2.f32 %v1572_v62 }
 0x1b1   : > { %1934 = vpow2.f32 %v1573_v0 }
 0x1b3   : > { %v2664_v1 = vpop.f32.mrb[4].mxu0 }
 0x1b4   : > { %v1574_v2 = vmul.f32 -1.442695, %v2664_v1  ;;  %v2667_v3 = vpop.f32.mrb[5].mxu0 }
 0x1b5   : > { %v1575_v4 = vmul.f32 -1.442695, %v2667_v3  ;;  %v2670_v5 = vpop.f32.mrb[6].mxu0  ;;  %v2692_v26 = vpop.f32.mrb[4].mxu1 }
 0x1b6   : > { %1936 = vpow2.f32 %v1574_v2  ;;  %v1576_v7 = vmul.f32 -1.442695, %v2670_v5  ;;  %v2675_v8 = vpop.f32.mrb[7].mxu0  ;;  %v2697_v29 = vpop.f32.mrb[5].mxu1 }
 0x1b7   : > { %1938 = vpow2.f32 %v1575_v4  ;;  %v1577_v10 = vmul.f32 -1.442695, %v2675_v8  ;;  %v2700_v31 = vpop.f32.mrb[6].mxu1 }
 0x1b8   : > { %v1929_v12 = vpop.eup %1928  ;;  %1940 = vpow2.f32 %v1576_v7  ;;  %v2702_v33 = vpop.f32.mrb[7].mxu1 }
 0x1b9   : > { %v1931_v14 = vpop.eup %1930  ;;  %v906_v15 = vadd.f32 1.0, %v1929_v12  ;;  %1942 = vpow2.f32 %v1577_v10 }
 0x1ba   : > { %v1933_v16 = vpop.eup %1932  ;;  %v907_v17 = vadd.f32 1.0, %v1931_v14 }
 0x1bb   : > { %v1935_v18 = vpop.eup %1934  ;;  %1944 = vrcp.f32 %v906_v15  ;;  %v908_v19 = vadd.f32 1.0, %v1933_v16  ;;  %v2684_v20 = vpop.f32.mrb[8].mxu0 }
 0x1bc   : > { %1946 = vrcp.f32 %v907_v17  ;;  %v909_v21 = vadd.f32 1.0, %v1935_v18  ;;  %v1578_v22 = vmul.f32 -1.442695, %v2684_v20  ;;  %v2687_v23 = vpop.f32.mrb[9].mxu0 }
 0x1bd   : > { %1948 = vrcp.f32 %v908_v19  ;;  %v1579_v24 = vmul.f32 -1.442695, %v2687_v23  ;;  %v2690_v25 = vpop.f32.mrb[10].mxu0  ;;  %v2712_v47 = vpop.f32.mrb[8].mxu1 }
 0x1be   : > { %1950 = vrcp.f32 %v909_v21  ;;  %v1580_v27 = vmul.f32 -1.442695, %v2690_v25  ;;  %v2695_v28 = vpop.f32.mrb[11].mxu0  ;;  %v2718_v52 = vpop.f32.mrb[9].mxu1 }
 0x1bf   : > { %1952 = vpow2.f32 %v1578_v22  ;;  %v1581_v30 = vmul.f32 -1.442695, %v2695_v28  ;;  %v2722_v56 = vpop.f32.mrb[10].mxu1 }
 0x1c0   : > { %v1937_v32 = vpop.eup %1936  ;;  %1954 = vpow2.f32 %v1579_v24  ;;  %v2726_v62 = vpop.f32.mrb[11].mxu1 }
 0x1c1   : > { %v1939_v34 = vpop.eup %1938  ;;  %v910_v35 = vadd.f32 1.0, %v1937_v32  ;;  %1956 = vpow2.f32 %v1580_v27 }
 0x1c2   : > { %v1941_v36 = vpop.eup %1940  ;;  %v911_v37 = vadd.f32 1.0, %v1939_v34  ;;  %1958 = vpow2.f32 %v1581_v30 }
 0x1c3   : > { %v1943_v38 = vpop.eup %1942  ;;  %1960 = vrcp.f32 %v910_v35  ;;  %v912_v39 = vadd.f32 1.0, %v1941_v36  ;;  %v2704_v40 = vpop.f32.mrb[12].mxu0 }
 0x1c4   : > { %1962 = vrcp.f32 %v911_v37  ;;  %v913_v41 = vadd.f32 1.0, %v1943_v38  ;;  %v1582_v42 = vmul.f32 -1.442695, %v2704_v40  ;;  %v2707_v43 = vpop.f32.mrb[13].mxu0 }
 0x1c5   : > { %v1945_v44 = vpop.eup %1944  ;;  %1964 = vrcp.f32 %v912_v39  ;;  %v1583_v45 = vmul.f32 -1.442695, %v2707_v43  ;;  %v2710_v46 = vpop.f32.mrb[14].mxu0 }
 0x1c6   : > { %v1947_v48 = vpop.eup %1946  ;;  %v954_v49 = vmul.f32 %v1945_v44, %v2652_v57  ;;  %1966 = vrcp.f32 %v913_v41  ;;  %v1584_v50 = vmul.f32 -1.442695, %v2710_v46  ;;  %v2716_v51 = vpop.f32.mrb[15].mxu0 }
 0x1c7   : > { %v1949_v53 = vpop.eup %1948  ;;  %v955_v54 = vmul.f32 %v1947_v48, %v2655_v59  ;;  %1968 = vpow2.f32 %v1582_v42  ;;  %v1585_v55 = vmul.f32 -1.442695, %v2716_v51  ;;  %v849_v19 = vpop.f32.mrb[12].mxu1 }
 0x1c8   : > { %v1951_v58 = vpop.eup %1950  ;;  %v956_v60 = vmul.f32 %v1949_v53, %v2658_v61  ;;  %1970 = vpow2.f32 %v1583_v45  ;;  %v970_v57 = vmul.f32 %v954_v49, %v2672_v6  ;;  %v851_v22 = vpop.f32.mrb[13].mxu1 }
 0x1c9   : > { %v1953_v0 = vpop.eup %1952  ;;  %v957_v2 = vmul.f32 %v1951_v58, %v2661_v63  ;;  %1972 = vpow2.f32 %v1584_v50  ;;  %v971_v4 = vmul.f32 %v955_v54, %v2677_v9 }
 0x1ca   : > { %v1955_v59 = vpop.eup %1954  ;;  %v914_v7 = vadd.f32 1.0, %v1953_v0  ;;  %1974 = vpow2.f32 %v1585_v55  ;;  %v972_v10 = vmul.f32 %v956_v60, %v2680_v11 }
 0x1cb   : > { %v1957_v12 = vpop.eup %1956  ;;  %v915_v14 = vadd.f32 1.0, %v1955_v59  ;;  %v973_v61 = vmul.f32 %v957_v2, %v2682_v13  ;;  %v853_v13 = vpop.f32.mrb[14].mxu1 }
 0x1cc   : > { %v1959_v15 = vpop.eup %1958  ;;  %1976 = vrcp.f32 %v914_v7  ;;  %v916_v6 = vadd.f32 1.0, %v1957_v12  ;;  %v1002_v16 = vpack.c.bf16 %v972_v10, %v970_v57  ;;  %v855_v34 = vpop.f32.mrb[15].mxu1 }
 0x1cd   : > { %v1961_v17 = vpop.eup %1960  ;;  %1978 = vrcp.f32 %v915_v14  ;;  %v917_v18 = vadd.f32 1.0, %v1959_v15  ;;  %v1003_v63 = vpack.c.bf16 %v973_v61, %v971_v4  ;;  %v986_v61 = vld [vmem:[#allocation2] sm:$0xff] }
 0x1ce   : > { %v1963_v21 = vpop.eup %1962  ;;  %v958_v9 = vmul.f32 %v1961_v17, %v2664_v1  ;;  %1980 = vrcp.f32 %v916_v6  ;;  %v988_v6 = vld [vmem:[#allocation2 + $0x10] sm:$0xff]  ;;  %v989_v17 = vld [vmem:[#allocation2 + $0x18] sm:$0xff] }
 0x1cf   : > { %v1965_v24 = vpop.eup %1964  ;;  %v959_v11 = vmul.f32 %v1963_v21, %v2667_v3  ;;  %1982 = vrcp.f32 %v917_v18  ;;  %1234 = vmatprep.mubr.bf16.mxu0 %v1003_v63  ;;  %v990_v21 = vld [vmem:[#allocation2 + $0x20] sm:$0xff] }
 0x1d0   : > { %v1967_v27 = vpop.eup %1966  ;;  %v960_v30 = vmul.f32 %v1965_v24, %v2670_v5  ;;  %v974_v32 = vmul.f32 %v958_v9, %v2692_v26  ;;  %1235 = vmatmul.mubr.bf16.vlgmr.msra.gmra.mrb[16].mxu0 %v1002_v16  ;;  %v991_v9 = vld [vmem:[#allocation2 + $0x28] sm:$0xff]  ;;  %v992_v24 = vld [vmem:[#allocation2 + $0x30] sm:$0xff] }
 0x1d1   : > { %v1969_v35 = vpop.eup %1968  ;;  %v961_v36 = vmul.f32 %v1967_v27, %v2675_v8  ;;  %v975_v1 = vmul.f32 %v959_v11, %v2697_v29  ;;  %v993_v27 = vld [vmem:[#allocation2 + $0x38] sm:$0xff] }
 0x1d2   : > { %v1971_v37 = vpop.eup %1970  ;;  %v918_v38 = vadd.f32 1.0, %v1969_v35  ;;  %v976_v39 = vmul.f32 %v960_v30, %v2700_v31 }
 0x1d3   : > { %v1973_v3 = vpop.eup %1972  ;;  %v919_v41 = vadd.f32 1.0, %v1971_v37  ;;  %v977_v42 = vmul.f32 %v961_v36, %v2702_v33  ;;  %v995_v37 = vld [vmem:[#allocation2 + $0x48] sm:$0xff] }
 0x1d4   : > { %v1975_v44 = vpop.eup %1974  ;;  %1984 = vrcp.f32 %v918_v38  ;;  %v920_v5 = vadd.f32 1.0, %v1973_v3  ;;  %v1004_v45 = vpack.c.bf16 %v976_v39, %v974_v32  ;;  %v996_v39 = vld [vmem:[#allocation2 + $0x50] sm:$0xff] }
 0x1d5   : > { %1986 = vrcp.f32 %v919_v41  ;;  %v921_v26 = vadd.f32 1.0, %v1975_v44  ;;  %v1005_v48 = vpack.c.bf16 %v977_v42, %v975_v1  ;;  %v994_v1 = vld [vmem:[#allocation2 + $0x40] sm:$0xff]  ;;  %v997_v42 = vld [vmem:[#allocation2 + $0x58] sm:$0xff] }
 0x1d6   : > { %v1977_v49 = vpop.eup %1976  ;;  %1988 = vrcp.f32 %v920_v5 }
 0x1d7   : > { %v1979_v8 = vpop.eup %1978  ;;  %v962_v29 = vmul.f32 %v1977_v49, %v2684_v20  ;;  %1990 = vrcp.f32 %v921_v26  ;;  %1244 = vmatprep.mubr.bf16.mxu0 %v1005_v48  ;;  %v998_v49 = vld [vmem:[#allocation2 + $0x60] sm:$0xff] }
 0x1d8   : > { %v1981_v50 = vpop.eup %1980  ;;  %v963_v31 = vmul.f32 %v1979_v8, %v2687_v23  ;;  %1245 = vmatmul.mubr.bf16.gmra.mrb[20].mxu0 %v1004_v45  ;;  %v999_v8 = vld [vmem:[#allocation2 + $0x68] sm:$0xff] }
 0x1d9   : > { %v1983_v53 = vpop.eup %1982  ;;  %v964_v33 = vmul.f32 %v1981_v50, %v2690_v25  ;;  %v978_v54 = vmul.f32 %v962_v29, %v2712_v47  ;;  %v1000_v50 = vld [vmem:[#allocation2 + $0x70] sm:$0xff] }
 0x1da   : > { %v965_v55 = vmul.f32 %v1983_v53, %v2695_v28  ;;  %v979_v58 = vmul.f32 %v963_v31, %v2718_v52 }
 0x1db   : > { %v980_v60 = vmul.f32 %v964_v33, %v2722_v56  ;;  %v1001_v33 = vld [vmem:[#allocation2 + $0x78] sm:$0xff] }
 0x1dc   : > { %v981_v57 = vmul.f32 %v965_v55, %v2726_v62 }
 0x1dd   : > { %v1006_v20 = vpack.c.bf16 %v980_v60, %v978_v54 }
 0x1de   : > { %v1985_v0 = vpop.eup %1984  ;;  %v1007_v2 = vpack.c.bf16 %v981_v57, %v979_v58 }
 0x1df   : > { %v1987_v4 = vpop.eup %1986  ;;  %v966_v23 = vmul.f32 %v1985_v0, %v2704_v40  ;;  %v987_v40 = vld [vmem:[#allocation2 + $0x8] sm:$0xff] }
 0x1e0   : > { %v1989_v59 = vpop.eup %1988  ;;  %v967_v7 = vmul.f32 %v1987_v4, %v2707_v43  ;;  %1254 = vmatprep.mubr.bf16.mxu1 %v1007_v2 }
 0x1e1   : > { %v1991_v25 = vpop.eup %1990  ;;  %v968_v47 = vmul.f32 %v1989_v59, %v2710_v46  ;;  %v982_v28 = vmul.f32 %v966_v23, %v849_v19  ;;  %1255 = vmatmul.mubr.bf16.vlgmr.msra.gmra.mrb[16].mxu1 %v1006_v20 }
 0x1e2   : > { %v969_v52 = vmul.f32 %v1991_v25, %v2716_v51  ;;  %v983_v56 = vmul.f32 %v967_v7, %v851_v22 }
 0x1e3   : > { %v984_v10 = vmul.f32 %v968_v47, %v853_v13 }
 0x1e4   : > { %v985_v62 = vmul.f32 %v969_v52, %v855_v34 }
 0x1e5   : > { %v1008_v12 = vpack.c.bf16 %v984_v10, %v982_v28 }
 0x1e6   : > { %v1009_v14 = vpack.c.bf16 %v985_v62, %v983_v56 }
 0x1e8   : > { %1264 = vmatprep.mubr.bf16.mxu1 %v1009_v14 }
 0x1e9   : > { %1265 = vmatmul.mubr.bf16.gmra.mrb[20].mxu1 %v1008_v12 }
 0x2a3   : > { %v1236_v15 = vpop.f32.mrb[16].mxu0 }
 0x2a4   : > { %v1275_v43 = vadd.f32 %v1236_v15, %v986_v61  ;;  %v1238_v16 = vpop.f32.mrb[17].mxu0 }
 0x2a5   : > { %v1276_v18 = vadd.f32 %v1238_v16, %v987_v40  ;;  %v1240_v46 = vpop.f32.mrb[18].mxu0 }
 0x2a6   : > { %1291 = vst [vmem:[#allocation2] sm:$0xff] %v1275_v43  ;;  %v1277_v63 = vadd.f32 %v1240_v46, %v988_v6  ;;  %v1242_v19 = vpop.f32.mrb[19].mxu0 }
 0x2a7   : > { %1292 = vst [vmem:[#allocation2 + $0x8] sm:$0xff] %v1276_v18  ;;  %v1278_v51 = vadd.f32 %v1242_v19, %v989_v17 }
 0x2a8   : > { %1293 = vst [vmem:[#allocation2 + $0x10] sm:$0xff] %v1277_v63 }
 0x2a9   : > { %1294 = vst [vmem:[#allocation2 + $0x18] sm:$0xff] %v1278_v51 }
 0x2ab   : > { %v1246_v22 = vpop.f32.mrb[20].mxu0 }
 0x2ac   : > { %v1279_v11 = vadd.f32 %v1246_v22, %v990_v21  ;;  %v1248_v13 = vpop.f32.mrb[21].mxu0 }
 0x2ad   : > { %v1280_v30 = vadd.f32 %v1248_v13, %v991_v9  ;;  %v1250_v32 = vpop.f32.mrb[22].mxu0  ;;  %v1311_v20 = vld [vmem:[#allocation2] sm:$0xff] (!%p1618_p12) }
 0x2ae   : > { %1295 = vst [vmem:[#allocation2 + $0x20] sm:$0xff] %v1279_v11  ;;  %v1281_v34 = vadd.f32 %v1250_v32, %v992_v24  ;;  %v1252_v35 = vpop.f32.mrb[23].mxu0  ;;  %v1312_v0 = vld [vmem:[#allocation2 + $0x8] sm:$0xff] (!%p1618_p12)  ;;  %1327 = vst [vmem:[%s2537_s12] sm:$0xff] (!%p1618_p12), %v1311_v20 }
 0x2af   : > { %1296 = vst [vmem:[#allocation2 + $0x28] sm:$0xff] %v1280_v30  ;;  %v1282_v36 = vadd.f32 %v1252_v35, %v993_v27  ;;  %v1313_v2 = vld [vmem:[#allocation2 + $0x10] sm:$0xff] (!%p1618_p12)  ;;  %1328 = vst [vmem:[%s2537_s12 + $0x8] sm:$0xff] (!%p1618_p12), %v1312_v0 }
 0x2b0   : > { %1297 = vst [vmem:[#allocation2 + $0x30] sm:$0xff] %v1281_v34  ;;  %1329 = vst [vmem:[%s2537_s12 + $0x10] sm:$0xff] (!%p1618_p12), %v1313_v2  ;;  %v1314_v4 = vld [vmem:[#allocation2 + $0x18] sm:$0xff] (!%p1618_p12) }
 0x2b1   : > { %1298 = vst [vmem:[#allocation2 + $0x38] sm:$0xff] %v1282_v36  ;;  %1330 = vst [vmem:[%s2537_s12 + $0x18] sm:$0xff] (!%p1618_p12), %v1314_v4 }
 0x2b4   : > { %v1256_v38 = vpop.f32.mrb[16].mxu1 }
 0x2b5   : > { %v1283_v3 = vadd.f32 %v1256_v38, %v994_v1  ;;  %v1258_v41 = vpop.f32.mrb[17].mxu1  ;;  %v1315_v23 = vld [vmem:[#allocation2 + $0x20] sm:$0xff] (!%p1618_p12) }
 0x2b6   : > { %v1284_v44 = vadd.f32 %v1258_v41, %v995_v37  ;;  %v1260_v5 = vpop.f32.mrb[18].mxu1  ;;  %v1316_v59 = vld [vmem:[#allocation2 + $0x28] sm:$0xff] (!%p1618_p12)  ;;  %1331 = vst [vmem:[%s2537_s12 + $0x20] sm:$0xff] (!%p1618_p12), %v1315_v23 }
 0x2b7   : > { %1299 = vst [vmem:[#allocation2 + $0x40] sm:$0xff] %v1283_v3  ;;  %v1285_v45 = vadd.f32 %v1260_v5, %v996_v39  ;;  %v1262_v26 = vpop.f32.mrb[19].mxu1  ;;  %1332 = vst [vmem:[%s2537_s12 + $0x28] sm:$0xff] (!%p1618_p12), %v1316_v59  ;;  %v1317_v7 = vld [vmem:[#allocation2 + $0x30] sm:$0xff] (!%p1618_p12) }
 0x2b8   : > { %1300 = vst [vmem:[#allocation2 + $0x48] sm:$0xff] %v1284_v44  ;;  %v1286_v48 = vadd.f32 %v1262_v26, %v997_v42  ;;  %v1318_v25 = vld [vmem:[#allocation2 + $0x38] sm:$0xff] (!%p1618_p12)  ;;  %1333 = vst [vmem:[%s2537_s12 + $0x30] sm:$0xff] (!%p1618_p12), %v1317_v7 }
 0x2b9   : > { %1301 = vst [vmem:[#allocation2 + $0x50] sm:$0xff] %v1285_v45  ;;  %1334 = vst [vmem:[%s2537_s12 + $0x38] sm:$0xff] (!%p1618_p12), %v1318_v25 }
 0x2ba   : > { %1302 = vst [vmem:[#allocation2 + $0x58] sm:$0xff] %v1286_v48 }
 0x2bc   : > { %v1266_v29 = vpop.f32.mrb[20].mxu1  ;;  %1310 = sbr.rel (%p1618_p12) target bundleno = 715 (0x2cb), region = 52 }
 0x2bd   : > { %v1287_v31 = vadd.f32 %v1266_v29, %v998_v49  ;;  %v1268_v53 = vpop.f32.mrb[21].mxu1 }
 0x2be   : > { %v1288_v54 = vadd.f32 %v1268_v53, %v999_v8  ;;  %v1270_v55 = vpop.f32.mrb[22].mxu1  ;;  %v1319_v47 = vld [vmem:[#allocation2 + $0x40] sm:$0xff] (!%p1618_p12) }
 0x2bf   : > { %1303 = vst [vmem:[#allocation2 + $0x60] sm:$0xff] %v1287_v31  ;;  %v1289_v58 = vadd.f32 %v1270_v55, %v1000_v50  ;;  %v1272_v60 = vpop.f32.mrb[23].mxu1  ;;  %1335 = vst [vmem:[%s2537_s12 + $0x40] sm:$0xff] (!%p1618_p12), %v1319_v47  ;;  %v1320_v28 = vld [vmem:[#allocation2 + $0x48] sm:$0xff] (!%p1618_p12) }
 0x2c0   : > { %1304 = vst [vmem:[#allocation2 + $0x68] sm:$0xff] %v1288_v54  ;;  %v1290_v57 = vadd.f32 %v1272_v60, %v1001_v33  ;;  %v1321_v52 = vld [vmem:[#allocation2 + $0x50] sm:$0xff] (!%p1618_p12)  ;;  %1336 = vst [vmem:[%s2537_s12 + $0x48] sm:$0xff] (!%p1618_p12), %v1320_v28 }
 0x2c1   : > { %1305 = vst [vmem:[#allocation2 + $0x70] sm:$0xff] %v1289_v58  ;;  %v1322_v56 = vld [vmem:[#allocation2 + $0x58] sm:$0xff] (!%p1618_p12)  ;;  %1337 = vst [vmem:[%s2537_s12 + $0x50] sm:$0xff] (!%p1618_p12), %v1321_v52 }
 0x2c2   : > { %1306 = vst [vmem:[#allocation2 + $0x78] sm:$0xff] %v1290_v57  ;;  %1338 = vst [vmem:[%s2537_s12 + $0x58] sm:$0xff] (!%p1618_p12), %v1322_v56 }
 0x2c6   : > { %v1323_v10 = vld [vmem:[#allocation2 + $0x60] sm:$0xff] }
 0x2c7   : > { %v1324_v62 = vld [vmem:[#allocation2 + $0x68] sm:$0xff]  ;;  %1339 = vst [vmem:[%s2537_s12 + $0x60] sm:$0xff] %v1323_v10 }
 0x2c8   : > { %v1325_v12 = vld [vmem:[#allocation2 + $0x70] sm:$0xff]  ;;  %1340 = vst [vmem:[%s2537_s12 + $0x68] sm:$0xff] %v1324_v62 }
 0x2c9   : > { %1341 = vst [vmem:[%s2537_s12 + $0x70] sm:$0xff] %v1325_v12  ;;  %v1326_v14 = vld [vmem:[#allocation2 + $0x78] sm:$0xff] }
 0x2ca   : > { %1342 = vst [vmem:[%s2537_s12 + $0x78] sm:$0xff] %v1326_v14 }
 0x2cb PF: > { %s1631_s18 = sshll.u32 %s2196_s19, 11  ;;  %s2887_s9 = sld [smem:[#allocation20_spill]] }
 0x2cc   : > { %s1358_s5 = sshll.u32 %s2537_s12, 4  ;;  %s1344_s8 = scalar_lea.sflag [#allocation5], %s2517_s26  ;;  %s2776_s5 = int_to_ptr.vmem [resolvable:$true] %s1358_s5 }
 0x2cd   : > { %s2082_s17 = scalar_lea.vmem %s2776_s5, 2048  ;;  %p2888_p11 = scmp.ne.s32.totalorder %s2874_s4, 0 }
 0x2ce   : > { %p2083_p13 = scmp.ne.s32.totalorder %s2776_s5, %s2082_s17  ;;  %s2219_s25 = smov [#allocation9]  }
 0x2cf   : > { %s2086_s3 = sshll.u32 %s2219_s25, 4  ;;  %s2087_s3 = int_to_ptr.vmem [resolvable:$false] %s2086_s3 }
 0x2d0   : > { %p2084_p6 = pnand %p2083_p13, %p2888_p11  ;;  %s2088_s19 = scalar_lea.vmem %s2087_s3, 4096 }
 0x2d1   : > { %s2773_s30 = scalar_lea.hbm %s2887_s9, %s1631_s18  ;;  %p2089_p5 = scmp.lt.s32.totalorder %s2776_s5, %s2087_s3 }
 0x2d2   : > { %p2085_p10 = pneg %p2084_p6  ;;  %p2090_p1 = scmp.lt.s32.totalorder %s2088_s19, %s2082_s17 }
 0x2d4   : > { %p2091_p0 = por %p2090_p1, %p2089_p5 }
 0x2d6   : > { %p2092_p9 = pnand %p2091_p0, %p2085_p10 }
 0x2d8   : > { %2095 = shalt.err (!%p2092_p9)
}
 0x2d9   : > { %s2096_s28 = scalar_lea.hbm %s2773_s30, 2048  ;;  %s2100_s6 = scalar_lea.hbm %s2887_s9, 4096 }
 0x2da   : > { %p2097_p2 = scmp.ne.s32.totalorder %s2773_s30, %s2096_s28  ;;  %p2101_p7 = scmp.lt.u32.totalorder %s2773_s30, %s2887_s9 }
 0x2db   : > { %p2102_p8 = scmp.lt.u32.totalorder %s2100_s6, %s2096_s28  ;;  %p2104_p13 = scmp.lt.u32.totalorder %s2096_s28, %s2773_s30 }
 0x2dc   : > { %p2098_p3 = pnand %p2097_p2, %p2888_p11 }
 0x2dd   : > { %p2103_p12 = por %p2102_p8, %p2101_p7 }
 0x2de   : > { %p2099_p4 = pneg %p2098_p3 }
 0x2df   : > { %p2105_p6 = por %p2104_p13, %p2103_p12 }
 0x2e1   : > { %p2106_p10 = pnand %p2105_p6, %p2099_p4 }
 0x2e3   : > { %2109 = shalt.err (!%p2106_p10)
}
 0x2e4   : > { %s2220_s7 = smov 256   ;;  %s2221_s1 = smov 16  }
 0x2e5   : > { %1670 = dma.vmem_to_hbm [thread:$0]  (%p2888_p11), %s2776_s5, 2048, %s2773_s30, %s1344_s8, %s2220_s7, %s2220_s7, %s2221_s1  }
 0x2e6 PF: > { %p1687_p5 = scmp.ge.s32.totalorder %s2208_s22, 2  ;;  %s1373_s12 = sand.u32 1, %s2180_s15  }
 0x2e7   : > { %p2889_p1 = scmp.ne.s32.totalorder %s2876_s23, 0  ;;  %s1374_s18 = scalar_lea.sflag [#allocation5], %s1373_s12 }
 0x2e9   : > { %p1683_p0 = pnand %p1687_p5, %p2889_p1 }
 0x2eb   : > { %2163 = dma.done.wait (!%p1683_p0), %s1374_s18, 2048  }
 0x2ec   : > { %2165 = vsyncadd (!%p1683_p0), %s1374_s18, 4294965248  ;;  %s22_s22 = sadd.s32 1, %s2208_s22   ;;  %s2890_s27 = sld [smem:[#allocation16_spill]] }
 0x2ed   : > { %p19_p9 = scmp.ge.s32.totalorder %s22_s22, 6   ;;  %s2891_s4 = sld [smem:[#allocation13_spill]] }
 0x2ee   : > { %s2892_s17 = sld [smem:[#allocation18_spill]]  ;;  %s2893_s19 = sld [smem:[#allocation14_spill]] }
 0x2ef   : > { %s2894_s26 = sld [smem:[#allocation15_spill]]  ;;  %s2895_s21 = sld [smem:[#allocation17_spill]] }
 0x2f0   : > { %s2896_s12 = smov %s2172_s13  ;;  %s2897_s13 = smov %s2176_s14 }
 0x2f1   : > { %s2899_s15 = smov %s2184_s16  ;;  %s2901_s18 = smov %s2200_s20 }
 0x2f2   : > { %s2898_s14 = smov %s2890_s27  ;;  %21 = sbr.rel (!%p19_p9) target bundleno = 14 (0xe), region = 109 }
 0x2f3   : > { %s2900_s16 = smov %s2891_s4 }
 0x2f5   : > { %s2902_s20 = smov %s2894_s26 }
 0x2f9   :  { %1379 = vsyncpa [#allocation4], 1 }
 0x2fa   :  { %1381 = vsyncpa [#allocation4 + $0x1], 1 }
 0x2fb   :  { %1382 = vsyncpa [#allocation7], 1 }
 0x2fc   :  { %1384 = vsyncpa [#allocation7 + $0x1], 1 }
 0x2fd   :  { %1385 = vsyncpa [#allocation5], 1 }
 0x2fe   :  { %1387 = vsyncpa [#allocation5 + $0x1], 1 }

</bundles_post_ra>
